<compile_context>
chip_gen: v7x
topology: tpu7x:2x2x1
jax: 0.10.0
libtpu: 0.0.40
codegen_flags: <defaults>
</compile_context>

<pallas_src>
import jax
import jax.numpy as jnp
from jax.experimental import pallas as pl
from jax.experimental.pallas import tpu as pltpu  # noqa: F401  (kept for TPU backend import parity)

_LANE = 128
# Conservative bound on bytes kept resident in VMEM at once by this whole-array
# fused kernel (inputs + all params + padded output).  Well under the scoped
# VMEM default on every generation (v5e 16 MiB / v6e 32 MiB / v7x 32 MiB).
_VMEM_BUDGET_BYTES = 12 * 1024 * 1024


def _round_up(n, m):
    return ((n + m - 1) // m) * m


# ----------------------------- Pallas kernel ------------------------------- #

def _ensemble_mlp_kernel(x_ref, *refs):
    """Fused ensemble MLP.

    refs = (w_0, b_0, w_1, b_1, ..., w_{L-1}, b_{L-1}, o_ref)
    x_ref : (E, B, D_in)
    w_i   : (E, D_i, D_{i+1})      b_i : (E, 1, D_{i+1})
    o_ref : (E, B, D_out_padded)   (last-layer D_out zero-padded to 128 lanes)
    ReLU after every layer except the last (Identity output activation).
    """
    o_ref = refs[-1]
    param_refs = refs[:-1]
    n_layers = len(param_refs) // 2
    ensemble_size = x_ref.shape[0]

    # E and n_layers are tiny static constants: fully unroll both loops so the
    # whole forward is straight-line MXU dots + VPU adds/ReLUs, with every
    # intermediate activation held in vregs (never written back to HBM).
    for e in range(ensemble_size):
        h = x_ref[e]                               # (B, D_in)
        for li in range(n_layers):
            w = param_refs[2 * li][e]              # (D_li, D_{li+1})
            b = param_refs[2 * li + 1][e]          # (1,  D_{li+1})
            h = jnp.dot(h, w, preferred_element_type=jnp.float32) + b
            if li != n_layers - 1:
                h = jnp.maximum(h, 0.0)            # hidden activation: ReLU
        o_ref[e] = h.astype(o_ref.dtype)           # lane-dense (B, 128k) store


# ------------------------------- Wrapper ------------------------------------ #

def ensemble_mlp_forward(params, x):
    """params: list of (w, b) with w (E, D_in, D_out), b (E, 1, D_out).
    x: (E, B, input_dim) -> (E, B, output_dim)."""
    E, B, _ = x.shape
    out_dim = params[-1][0].shape[-1]
    out_dim_pad = _round_up(out_dim, _LANE)

    # Pad the final layer's output dim so the kernel's output store is
    # lane-dense (>=128 lanes).  Padded columns compute to exactly 0.
    w_last, b_last = params[-1]
    pad = out_dim_pad - out_dim
    if pad:
        w_last = jnp.pad(w_last, ((0, 0), (0, 0), (0, pad)))
        b_last = jnp.pad(b_last, ((0, 0), (0, 0), (0, pad)))
    padded_params = list(params[:-1]) + [(w_last, b_last)]

    flat_inputs = [x]
    for w, b in padded_params:
        flat_inputs.extend((w, b))

    resident_bytes = sum(int(a.size) * a.dtype.itemsize for a in flat_inputs)
    resident_bytes += E * B * out_dim_pad * 4
    # TODO(synk): add a K-tiled grid + VMEM f32 accumulator path (init/finalize
    # via pl.when) instead of asserting, for hidden dims large enough that the
    # whole-array-in-VMEM assumption breaks (relevant for v7x's 64 MiB VMEM).
    assert resident_bytes <= _VMEM_BUDGET_BYTES, (
        f"fused EnsembleMLP kernel needs {resident_bytes} B resident in VMEM, "
        f"over budget {_VMEM_BUDGET_BYTES} B; add K-tiling for these shapes")

    out_padded = pl.pallas_call(
        _ensemble_mlp_kernel,
        out_shape=jax.ShapeDtypeStruct((E, B, out_dim_pad), x.dtype),
        # No grid / no BlockSpecs: single invocation, every operand placed
        # whole in VMEM (block == full array, so (8,128) rules are satisfied).
    )(*flat_inputs)

    return out_padded[..., :out_dim]


# ------------------------- Parameter construction -------------------------- #

def init_ensemble_mlp_params(key, input_dim, hidden_dims, output_dim, ensemble_size):
    """Deterministic synthetic init matching the module's parameter shapes:
    weight (E, in, out), bias (E, 1, out) per layer (kaiming-style gain for ReLU)."""
    dims = [input_dim] + list(hidden_dims) + [output_dim]
    params = []
    for i in range(len(dims) - 1):
        key, wk = jax.random.split(key)
        fan_in = dims[i]
        std = (2.0 / fan_in) ** 0.5
        w = std * jax.random.normal(
            wk, (ensemble_size, dims[i], dims[i + 1]), dtype=jnp.float32)
        b = jnp.zeros((ensemble_size, 1, dims[i + 1]), dtype=jnp.float32)
        params.append((w, b))
    return params


# --------------------------------- Demo ------------------------------------ #

if __name__ == "__main__":
    # Small shapes implied by the module's forward.
    ensemble_size = 3
    batch = 8
    input_dim = 16
    hidden_dims = [32, 32]
    output_dim = 4

    key = jax.random.PRNGKey(0)
    key, xk = jax.random.split(key)
    x = jax.random.normal(xk, (ensemble_size, batch, input_dim), dtype=jnp.float32)

    params = init_ensemble_mlp_params(
        key, input_dim, hidden_dims, output_dim, ensemble_size
    )

    out = ensemble_mlp_forward(params, x)
    out = jax.block_until_ready(out)

    # Pure-JAX reference of the same math.
    h_ref = x
    for li, (w, b) in enumerate(params):
        h_ref = jnp.einsum("ebi,eio->ebo", h_ref, w) + b
        if li != len(params) - 1:
            h_ref = jnp.maximum(h_ref, 0.0)

    assert out.shape == (ensemble_size, batch, output_dim)
    assert jnp.allclose(out, h_ref, atol=1e-4, rtol=1e-4), (
        float(jnp.max(jnp.abs(out - h_ref))))

    print("KERNEL_OK")
</pallas_src>

<mosaic_0001>
module attributes {stable_mosaic.version = 11 : i64} {
  func.func @_ensemble_mlp_kernel(%arg0: memref<3x8x16xf32, #tpu.memory_space<vmem>>, %arg1: memref<3x16x32xf32, #tpu.memory_space<vmem>>, %arg2: memref<3x1x32xf32, #tpu.memory_space<vmem>>, %arg3: memref<3x32x32xf32, #tpu.memory_space<vmem>>, %arg4: memref<3x1x32xf32, #tpu.memory_space<vmem>>, %arg5: memref<3x32x128xf32, #tpu.memory_space<vmem>>, %arg6: memref<3x1x128xf32, #tpu.memory_space<vmem>>, %arg7: memref<3x8x128xf32, #tpu.memory_space<vmem>>) attributes {dimension_semantics = [], scalar_prefetch = 0 : i64, scratch_operands = 0 : i64, tpu.core_type = #tpu.core_type<tc>} {
    %c0 = arith.constant 0 : index
    %c0_0 = arith.constant 0 : index
    %c0_1 = arith.constant 0 : index
    %0 = vector.load %arg0[%c0, %c0_0, %c0_1] : memref<3x8x16xf32, #tpu.memory_space<vmem>>, vector<1x8x16xf32>
    %1 = vector.shape_cast %0 : vector<1x8x16xf32> to vector<8x16xf32>
    %c0_2 = arith.constant 0 : index
    %c0_3 = arith.constant 0 : index
    %c0_4 = arith.constant 0 : index
    %2 = vector.load %arg1[%c0_2, %c0_3, %c0_4] : memref<3x16x32xf32, #tpu.memory_space<vmem>>, vector<1x16x32xf32>
    %3 = vector.shape_cast %2 : vector<1x16x32xf32> to vector<16x32xf32>
    %c0_5 = arith.constant 0 : index
    %c0_6 = arith.constant 0 : index
    %c0_7 = arith.constant 0 : index
    %4 = vector.load %arg2[%c0_5, %c0_6, %c0_7] : memref<3x1x32xf32, #tpu.memory_space<vmem>>, vector<1x1x32xf32>
    %5 = vector.shape_cast %4 : vector<1x1x32xf32> to vector<1x32xf32>
    %cst = arith.constant dense<0.000000e+00> : vector<8x32xf32>
    %6 = tpu.matmul %1, %3, %cst {dimension_numbers = #tpu.dot_dimension_numbers<[1], [0], [0], [1], [0, 0, 1, 1], [], []>} : vector<8x16xf32>, vector<16x32xf32>, vector<8x32xf32> -> vector<8x32xf32>
    %7 = vector.broadcast %5 : vector<1x32xf32> to vector<8x32xf32>
    %8 = arith.addf %6, %7 : vector<8x32xf32>
    %cst_8 = arith.constant 0.000000e+00 : f32
    %9 = vector.broadcast %cst_8 : f32 to vector<8x32xf32>
    %10 = arith.maximumf %8, %9 : vector<8x32xf32>
    %c0_9 = arith.constant 0 : index
    %c0_10 = arith.constant 0 : index
    %c0_11 = arith.constant 0 : index
    %11 = vector.load %arg3[%c0_9, %c0_10, %c0_11] : memref<3x32x32xf32, #tpu.memory_space<vmem>>, vector<1x32x32xf32>
    %12 = vector.shape_cast %11 : vector<1x32x32xf32> to vector<32x32xf32>
    %c0_12 = arith.constant 0 : index
    %c0_13 = arith.constant 0 : index
    %c0_14 = arith.constant 0 : index
    %13 = vector.load %arg4[%c0_12, %c0_13, %c0_14] : memref<3x1x32xf32, #tpu.memory_space<vmem>>, vector<1x1x32xf32>
    %14 = vector.shape_cast %13 : vector<1x1x32xf32> to vector<1x32xf32>
    %cst_15 = arith.constant dense<0.000000e+00> : vector<8x32xf32>
    %15 = tpu.matmul %10, %12, %cst_15 {dimension_numbers = #tpu.dot_dimension_numbers<[1], [0], [0], [1], [0, 0, 1, 1], [], []>} : vector<8x32xf32>, vector<32x32xf32>, vector<8x32xf32> -> vector<8x32xf32>
    %16 = vector.broadcast %14 : vector<1x32xf32> to vector<8x32xf32>
    %17 = arith.addf %15, %16 : vector<8x32xf32>
    %cst_16 = arith.constant 0.000000e+00 : f32
    %18 = vector.broadcast %cst_16 : f32 to vector<8x32xf32>
    %19 = arith.maximumf %17, %18 : vector<8x32xf32>
    %c0_17 = arith.constant 0 : index
    %c0_18 = arith.constant 0 : index
    %c0_19 = arith.constant 0 : index
    %20 = vector.load %arg5[%c0_17, %c0_18, %c0_19] : memref<3x32x128xf32, #tpu.memory_space<vmem>>, vector<1x32x128xf32>
    %21 = vector.shape_cast %20 : vector<1x32x128xf32> to vector<32x128xf32>
    %c0_20 = arith.constant 0 : index
    %c0_21 = arith.constant 0 : index
    %c0_22 = arith.constant 0 : index
    %22 = vector.load %arg6[%c0_20, %c0_21, %c0_22] : memref<3x1x128xf32, #tpu.memory_space<vmem>>, vector<1x1x128xf32>
    %23 = vector.shape_cast %22 : vector<1x1x128xf32> to vector<1x128xf32>
    %cst_23 = arith.constant dense<0.000000e+00> : vector<8x128xf32>
    %24 = tpu.matmul %19, %21, %cst_23 {dimension_numbers = #tpu.dot_dimension_numbers<[1], [0], [0], [1], [0, 0, 1, 1], [], []>} : vector<8x32xf32>, vector<32x128xf32>, vector<8x128xf32> -> vector<8x128xf32>
    %25 = vector.broadcast %23 : vector<1x128xf32> to vector<8x128xf32>
    %26 = arith.addf %24, %25 : vector<8x128xf32>
    %c0_24 = arith.constant 0 : index
    %c0_25 = arith.constant 0 : index
    %c0_26 = arith.constant 0 : index
    %27 = vector.load %arg7[%c0_24, %c0_25, %c0_26] : memref<3x8x128xf32, #tpu.memory_space<vmem>>, vector<1x8x128xf32>
    %28 = vector.shape_cast %27 : vector<1x8x128xf32> to vector<8x128xf32>
    %29 = vector.shape_cast %26 : vector<8x128xf32> to vector<1x8x128xf32>
    tpu.vector_store %arg7[%c0_24, %c0_25, %c0_26], %29 {strides = array<i32>} : memref<3x8x128xf32, #tpu.memory_space<vmem>>, vector<1x8x128xf32>,
    %c1 = arith.constant 1 : index
    %c0_27 = arith.constant 0 : index
    %c0_28 = arith.constant 0 : index
    %30 = vector.load %arg0[%c1, %c0_27, %c0_28] : memref<3x8x16xf32, #tpu.memory_space<vmem>>, vector<1x8x16xf32>
    %31 = vector.shape_cast %30 : vector<1x8x16xf32> to vector<8x16xf32>
    %c1_29 = arith.constant 1 : index
    %c0_30 = arith.constant 0 : index
    %c0_31 = arith.constant 0 : index
    %32 = vector.load %arg1[%c1_29, %c0_30, %c0_31] : memref<3x16x32xf32, #tpu.memory_space<vmem>>, vector<1x16x32xf32>
    %33 = vector.shape_cast %32 : vector<1x16x32xf32> to vector<16x32xf32>
    %c1_32 = arith.constant 1 : index
    %c0_33 = arith.constant 0 : index
    %c0_34 = arith.constant 0 : index
    %34 = vector.load %arg2[%c1_32, %c0_33, %c0_34] : memref<3x1x32xf32, #tpu.memory_space<vmem>>, vector<1x1x32xf32>
    %35 = vector.shape_cast %34 : vector<1x1x32xf32> to vector<1x32xf32>
    %cst_35 = arith.constant dense<0.000000e+00> : vector<8x32xf32>
    %36 = tpu.matmul %31, %33, %cst_35 {dimension_numbers = #tpu.dot_dimension_numbers<[1], [0], [0], [1], [0, 0, 1, 1], [], []>} : vector<8x16xf32>, vector<16x32xf32>, vector<8x32xf32> -> vector<8x32xf32>
    %37 = vector.broadcast %35 : vector<1x32xf32> to vector<8x32xf32>
    %38 = arith.addf %36, %37 : vector<8x32xf32>
    %cst_36 = arith.constant 0.000000e+00 : f32
    %39 = vector.broadcast %cst_36 : f32 to vector<8x32xf32>
    %40 = arith.maximumf %38, %39 : vector<8x32xf32>
    %c1_37 = arith.constant 1 : index
    %c0_38 = arith.constant 0 : index
    %c0_39 = arith.constant 0 : index
    %41 = vector.load %arg3[%c1_37, %c0_38, %c0_39] : memref<3x32x32xf32, #tpu.memory_space<vmem>>, vector<1x32x32xf32>
    %42 = vector.shape_cast %41 : vector<1x32x32xf32> to vector<32x32xf32>
    %c1_40 = arith.constant 1 : index
    %c0_41 = arith.constant 0 : index
    %c0_42 = arith.constant 0 : index
    %43 = vector.load %arg4[%c1_40, %c0_41, %c0_42] : memref<3x1x32xf32, #tpu.memory_space<vmem>>, vector<1x1x32xf32>
    %44 = vector.shape_cast %43 : vector<1x1x32xf32> to vector<1x32xf32>
    %cst_43 = arith.constant dense<0.000000e+00> : vector<8x32xf32>
    %45 = tpu.matmul %40, %42, %cst_43 {dimension_numbers = #tpu.dot_dimension_numbers<[1], [0], [0], [1], [0, 0, 1, 1], [], []>} : vector<8x32xf32>, vector<32x32xf32>, vector<8x32xf32> -> vector<8x32xf32>
    %46 = vector.broadcast %44 : vector<1x32xf32> to vector<8x32xf32>
    %47 = arith.addf %45, %46 : vector<8x32xf32>
    %cst_44 = arith.constant 0.000000e+00 : f32
    %48 = vector.broadcast %cst_44 : f32 to vector<8x32xf32>
    %49 = arith.maximumf %47, %48 : vector<8x32xf32>
    %c1_45 = arith.constant 1 : index
    %c0_46 = arith.constant 0 : index
    %c0_47 = arith.constant 0 : index
    %50 = vector.load %arg5[%c1_45, %c0_46, %c0_47] : memref<3x32x128xf32, #tpu.memory_space<vmem>>, vector<1x32x128xf32>
    %51 = vector.shape_cast %50 : vector<1x32x128xf32> to vector<32x128xf32>
    %c1_48 = arith.constant 1 : index
    %c0_49 = arith.constant 0 : index
    %c0_50 = arith.constant 0 : index
    %52 = vector.load %arg6[%c1_48, %c0_49, %c0_50] : memref<3x1x128xf32, #tpu.memory_space<vmem>>, vector<1x1x128xf32>
    %53 = vector.shape_cast %52 : vector<1x1x128xf32> to vector<1x128xf32>
    %cst_51 = arith.constant dense<0.000000e+00> : vector<8x128xf32>
    %54 = tpu.matmul %49, %51, %cst_51 {dimension_numbers = #tpu.dot_dimension_numbers<[1], [0], [0], [1], [0, 0, 1, 1], [], []>} : vector<8x32xf32>, vector<32x128xf32>, vector<8x128xf32> -> vector<8x128xf32>
    %55 = vector.broadcast %53 : vector<1x128xf32> to vector<8x128xf32>
    %56 = arith.addf %54, %55 : vector<8x128xf32>
    %c1_52 = arith.constant 1 : index
    %c0_53 = arith.constant 0 : index
    %c0_54 = arith.constant 0 : index
    %57 = vector.load %arg7[%c1_52, %c0_53, %c0_54] : memref<3x8x128xf32, #tpu.memory_space<vmem>>, vector<1x8x128xf32>
    %58 = vector.shape_cast %57 : vector<1x8x128xf32> to vector<8x128xf32>
    %59 = vector.shape_cast %56 : vector<8x128xf32> to vector<1x8x128xf32>
    tpu.vector_store %arg7[%c1_52, %c0_53, %c0_54], %59 {strides = array<i32>} : memref<3x8x128xf32, #tpu.memory_space<vmem>>, vector<1x8x128xf32>,
    %c2 = arith.constant 2 : index
    %c0_55 = arith.constant 0 : index
    %c0_56 = arith.constant 0 : index
    %60 = vector.load %arg0[%c2, %c0_55, %c0_56] : memref<3x8x16xf32, #tpu.memory_space<vmem>>, vector<1x8x16xf32>
    %61 = vector.shape_cast %60 : vector<1x8x16xf32> to vector<8x16xf32>
    %c2_57 = arith.constant 2 : index
    %c0_58 = arith.constant 0 : index
    %c0_59 = arith.constant 0 : index
    %62 = vector.load %arg1[%c2_57, %c0_58, %c0_59] : memref<3x16x32xf32, #tpu.memory_space<vmem>>, vector<1x16x32xf32>
    %63 = vector.shape_cast %62 : vector<1x16x32xf32> to vector<16x32xf32>
    %c2_60 = arith.constant 2 : index
    %c0_61 = arith.constant 0 : index
    %c0_62 = arith.constant 0 : index
    %64 = vector.load %arg2[%c2_60, %c0_61, %c0_62] : memref<3x1x32xf32, #tpu.memory_space<vmem>>, vector<1x1x32xf32>
    %65 = vector.shape_cast %64 : vector<1x1x32xf32> to vector<1x32xf32>
    %cst_63 = arith.constant dense<0.000000e+00> : vector<8x32xf32>
    %66 = tpu.matmul %61, %63, %cst_63 {dimension_numbers = #tpu.dot_dimension_numbers<[1], [0], [0], [1], [0, 0, 1, 1], [], []>} : vector<8x16xf32>, vector<16x32xf32>, vector<8x32xf32> -> vector<8x32xf32>
    %67 = vector.broadcast %65 : vector<1x32xf32> to vector<8x32xf32>
    %68 = arith.addf %66, %67 : vector<8x32xf32>
    %cst_64 = arith.constant 0.000000e+00 : f32
    %69 = vector.broadcast %cst_64 : f32 to vector<8x32xf32>
    %70 = arith.maximumf %68, %69 : vector<8x32xf32>
    %c2_65 = arith.constant 2 : index
    %c0_66 = arith.constant 0 : index
    %c0_67 = arith.constant 0 : index
    %71 = vector.load %arg3[%c2_65, %c0_66, %c0_67] : memref<3x32x32xf32, #tpu.memory_space<vmem>>, vector<1x32x32xf32>
    %72 = vector.shape_cast %71 : vector<1x32x32xf32> to vector<32x32xf32>
    %c2_68 = arith.constant 2 : index
    %c0_69 = arith.constant 0 : index
    %c0_70 = arith.constant 0 : index
    %73 = vector.load %arg4[%c2_68, %c0_69, %c0_70] : memref<3x1x32xf32, #tpu.memory_space<vmem>>, vector<1x1x32xf32>
    %74 = vector.shape_cast %73 : vector<1x1x32xf32> to vector<1x32xf32>
    %cst_71 = arith.constant dense<0.000000e+00> : vector<8x32xf32>
    %75 = tpu.matmul %70, %72, %cst_71 {dimension_numbers = #tpu.dot_dimension_numbers<[1], [0], [0], [1], [0, 0, 1, 1], [], []>} : vector<8x32xf32>, vector<32x32xf32>, vector<8x32xf32> -> vector<8x32xf32>
    %76 = vector.broadcast %74 : vector<1x32xf32> to vector<8x32xf32>
    %77 = arith.addf %75, %76 : vector<8x32xf32>
    %cst_72 = arith.constant 0.000000e+00 : f32
    %78 = vector.broadcast %cst_72 : f32 to vector<8x32xf32>
    %79 = arith.maximumf %77, %78 : vector<8x32xf32>
    %c2_73 = arith.constant 2 : index
    %c0_74 = arith.constant 0 : index
    %c0_75 = arith.constant 0 : index
    %80 = vector.load %arg5[%c2_73, %c0_74, %c0_75] : memref<3x32x128xf32, #tpu.memory_space<vmem>>, vector<1x32x128xf32>
    %81 = vector.shape_cast %80 : vector<1x32x128xf32> to vector<32x128xf32>
    %c2_76 = arith.constant 2 : index
    %c0_77 = arith.constant 0 : index
    %c0_78 = arith.constant 0 : index
    %82 = vector.load %arg6[%c2_76, %c0_77, %c0_78] : memref<3x1x128xf32, #tpu.memory_space<vmem>>, vector<1x1x128xf32>
    %83 = vector.shape_cast %82 : vector<1x1x128xf32> to vector<1x128xf32>
    %cst_79 = arith.constant dense<0.000000e+00> : vector<8x128xf32>
    %84 = tpu.matmul %79, %81, %cst_79 {dimension_numbers = #tpu.dot_dimension_numbers<[1], [0], [0], [1], [0, 0, 1, 1], [], []>} : vector<8x32xf32>, vector<32x128xf32>, vector<8x128xf32> -> vector<8x128xf32>
    %85 = vector.broadcast %83 : vector<1x128xf32> to vector<8x128xf32>
    %86 = arith.addf %84, %85 : vector<8x128xf32>
    %c2_80 = arith.constant 2 : index
    %c0_81 = arith.constant 0 : index
    %c0_82 = arith.constant 0 : index
    %87 = vector.load %arg7[%c2_80, %c0_81, %c0_82] : memref<3x8x128xf32, #tpu.memory_space<vmem>>, vector<1x8x128xf32>
    %88 = vector.shape_cast %87 : vector<1x8x128xf32> to vector<8x128xf32>
    %89 = vector.shape_cast %86 : vector<8x128xf32> to vector<1x8x128xf32>
    tpu.vector_store %arg7[%c2_80, %c0_81, %c0_82], %89 {strides = array<i32>} : memref<3x8x128xf32, #tpu.memory_space<vmem>>, vector<1x8x128xf32>,
    return
  }
}

</mosaic_0001>

<bundles_post_ra>
// kernel: tpu_custom_call.1
= control target key start
LH: loop header
LB: loop body
LE: loop exit
PB: predicated region body
PF: predicated region fallthrough
CT: control target
= control target key end

     0   :  { %12 = vsyncpa [#allocation3], 0  ;;  %s1412_s0 = inlined_call_operand.hbm [shape: f32[3,8,16], index: 0, kind: input, shape index: {}]   ;;  %s1413_s1 = inlined_call_operand.hbm [shape: f32[3,16,32], index: 1, kind: input, shape index: {}]   ;;  %s1414_s2 = inlined_call_operand.vmem [shape: f32[3,1,32], index: 2, kind: input, shape index: {}]   ;;  %s1415_s3 = inlined_call_operand.hbm [shape: f32[3,32,32], index: 3, kind: input, shape index: {}]   ;;  %s1416_s4 = inlined_call_operand.vmem [shape: f32[3,1,32], index: 4, kind: input, shape index: {}]   ;;  %s1417_s5 = inlined_call_operand.hbm [shape: f32[3,32,128], index: 5, kind: input, shape index: {}]   ;;  %s1418_s6 = inlined_call_operand.vmem [shape: f32[3,1,128], index: 6, kind: input, shape index: {}]   ;;  %s1419_s7 = inlined_call_operand.hbm [shape: f32[3,8,128], index: 7, kind: output, shape index: {}]  }
   0x1   :  { %13 = vsyncpa [#allocation6], 0 }
   0x2   :  { %14 = vsyncpa [#allocation9], 0 }
   0x3   :  { %15 = vsyncpa [#allocation4], 0  ;;  %s1204_s24 = smov [#allocation5]   ;;  %s1205_s26 = smov [#allocation2]  }
   0x4   :  { %s33_s25 = sshll.u32 %s1204_s24, 4  ;;  %s21_s27 = sshll.u32 %s1205_s26, 4  ;;  %s34_s25 = int_to_ptr.vmem [resolvable:$true] %s33_s25  ;;  %s1254_s27 = int_to_ptr.vmem [resolvable:$true] %s21_s27 }
   0x5   :  { %s1086_s30 = scalar_lea.hbm %s1413_s1, 768 }
   0x6   :  { %p1087_p0 = scmp.ne.s32.totalorder %s1413_s1, %s1086_s30  ;;  %p1090_p1 = scmp.lt.u32.totalorder %s1086_s30, %s1413_s1 }
   0x8   :  { %p1092_p2 = pnand %p1090_p1, %p1087_p0 }
   0xa   :  { %1095 = shalt.err (!%p1092_p2)
}
   0xb   :  { %s1096_s12 = scalar_lea.vmem %s34_s25, 768  ;;  %p1101_p4 = scmp.lt.s32.totalorder %s34_s25, %s34_s25 }
   0xc   :  { %p1097_p3 = scmp.ne.s32.totalorder %s34_s25, %s1096_s12  ;;  %p1102_p5 = scmp.lt.s32.totalorder %s1096_s12, %s1096_s12 }
   0xe   :  { %p1103_p6 = por %p1102_p5, %p1101_p4 }
  0x10   :  { %p1104_p7 = pnand %p1103_p6, %p1097_p3 }
  0x12   :  { %1107 = shalt.err (!%p1104_p7)
}
  0x13   :  { %s1206_s13 = smov 128   ;;  %s1207_s14 = smov 8  }
  0x14   :  { %39 = dma.hbm_to_vmem [thread:$0]  %s1413_s1, 768, %s34_s25, [#allocation6], %s1206_s13, %s1206_s13, %s1207_s14  }
  0x15   :  { %s1108_s19 = scalar_lea.hbm %s1412_s0, 384 }
  0x16   :  { %p1109_p8 = scmp.ne.s32.totalorder %s1412_s0, %s1108_s19  ;;  %p1112_p9 = scmp.lt.u32.totalorder %s1108_s19, %s1412_s0 }
  0x18   :  { %p1114_p10 = pnand %p1112_p9, %p1109_p8 }
  0x1a   :  { %1117 = shalt.err (!%p1114_p10)
}
  0x1b   :  { %s1118_s24 = scalar_lea.vmem %s1254_s27, 384  ;;  %p1123_p12 = scmp.lt.s32.totalorder %s1254_s27, %s1254_s27 }
  0x1c   :  { %p1119_p11 = scmp.ne.s32.totalorder %s1254_s27, %s1118_s24  ;;  %p1124_p13 = scmp.lt.s32.totalorder %s1118_s24, %s1118_s24 }
  0x1e   :  { %p1125_p0 = por %p1124_p13, %p1123_p12 }
  0x20   :  { %p1126_p1 = pnand %p1125_p0, %p1119_p11 }
  0x22   :  { %1129 = shalt.err (!%p1126_p1)
}
  0x23   :  { %27 = dma.hbm_to_vmem [thread:$0]  %s1412_s0, 384, %s1254_s27, [#allocation3], %s1206_s13, %s1206_s13, %s1207_s14  }
  0x24   :  { %s1208_s26 = smov [#allocation7]   ;;  %s1209_s29 = smov [#allocation8]  }
  0x25   :  { %s47_s28 = sshll.u32 %s1208_s26, 4  ;;  %s61_s30 = sshll.u32 %s1209_s29, 4  ;;  %s48_s28 = int_to_ptr.vmem [resolvable:$true] %s47_s28  ;;  %s1291_s30 = int_to_ptr.vmem [resolvable:$true] %s61_s30 }
  0x26   :  { %s1130_s10 = scalar_lea.hbm %s1415_s3, 1536 }
  0x27   :  { %p1131_p2 = scmp.ne.s32.totalorder %s1415_s3, %s1130_s10  ;;  %p1134_p3 = scmp.lt.u32.totalorder %s1130_s10, %s1415_s3 }
  0x29   :  { %p1136_p4 = pnand %p1134_p3, %p1131_p2 }
  0x2b   :  { %1139 = shalt.err (!%p1136_p4)
}
  0x2c   :  { %s1140_s0 = scalar_lea.vmem %s48_s28, 1536  ;;  %p1145_p6 = scmp.lt.s32.totalorder %s48_s28, %s48_s28 }
  0x2d   :  { %p1141_p5 = scmp.ne.s32.totalorder %s48_s28, %s1140_s0  ;;  %p1146_p7 = scmp.lt.s32.totalorder %s1140_s0, %s1140_s0 }
  0x2f   :  { %p1147_p8 = por %p1146_p7, %p1145_p6 }
  0x31   :  { %p1148_p9 = pnand %p1147_p8, %p1141_p5 }
  0x33   :  { %1151 = shalt.err (!%p1148_p9)
}
  0x34   :  { %53 = dma.hbm_to_vmem [thread:$0]  %s1415_s3, 1536, %s48_s28, [#allocation6], %s1206_s13, %s1206_s13, %s1207_s14  }
  0x35   :  { %s1152_s20 = scalar_lea.hbm %s1417_s5, 1536 }
  0x36   :  { %p1153_p10 = scmp.ne.s32.totalorder %s1417_s5, %s1152_s20  ;;  %p1156_p11 = scmp.lt.u32.totalorder %s1152_s20, %s1417_s5 }
  0x38   :  { %p1158_p12 = pnand %p1156_p11, %p1153_p10 }
  0x3a   :  { %1161 = shalt.err (!%p1158_p12)
}
  0x3b   :  { %s1162_s1 = scalar_lea.vmem %s1291_s30, 1536  ;;  %p1167_p0 = scmp.lt.s32.totalorder %s1291_s30, %s1291_s30 }
  0x3c   :  { %p1163_p13 = scmp.ne.s32.totalorder %s1291_s30, %s1162_s1  ;;  %p1168_p1 = scmp.lt.s32.totalorder %s1162_s1, %s1162_s1 }
  0x3e   :  { %p1169_p2 = por %p1168_p1, %p1167_p0 }
  0x40   :  { %p1170_p3 = pnand %p1169_p2, %p1163_p13 }
  0x42   :  { %1173 = shalt.err (!%p1170_p3)
}
  0x43   :  { %67 = dma.hbm_to_vmem [thread:$0]  %s1417_s5, 1536, %s1291_s30, [#allocation9], %s1206_s13, %s1206_s13, %s1207_s14  }
  0x44   :  { %1196 = dma.done.wait [#allocation3], 384  }
  0x45   :  { %1197 = vsyncadd [#allocation3], 4294966912 }
  0x46   :  { %1198 = dma.done.wait [#allocation6], 2304  }
  0x47   :  { %1199 = vsyncadd [#allocation6], 4294964992 }
  0x48   :  { %1200 = dma.done.wait [#allocation9], 1536  }
  0x49   :  { %1201 = vsyncadd [#allocation9], 4294965760  ;;  %v1210_v0 = vmov 0.0|0.0   ;;  %vm1211_vm0 = vmmov 0   ;;  %v1212_v1 = vmov 0.0   ;;  %v83_v2 = vld [vmem:[#allocation5] sm:$0xff] }
  0x4a   :  { %1031 = vmatprep.subr.bf16.mxu0 %v1210_v0  ;;  %948 = vmatprep.mubr.msk.f32.mxu0 %vm1211_vm0, %v1212_v1  ;;  %v84_v3 = vld [vmem:[#allocation5 + $0x8] sm:$0xff]  ;;  %v167_v5 = vld [vmem:[#allocation7] sm:$0xff]  ;;  %v168_v6 = vld [vmem:[#allocation7 + $0x8] sm:$0xff]  ;;  %vm92_vm1 = vcmask 130048   ;;  %vm178_vm2 = vcmask 261120   ;;  %s1213_s20 = smov [#allocation10]  }
  0x4b   :  { %1034 = vmatprep.subr.bf16.mxu1 %v1210_v0  ;;  %959 = vmatprep.mubr.msk.f32.mxu1 %vm1211_vm0, %v1212_v1  ;;  %v1032_v4 = vpack.c.bf16 %v84_v3, %v83_v2  ;;  %v1035_v7 = vpack.c.bf16 %v168_v6, %v167_v5  ;;  %v82_v8 = vld [vmem:[#allocation2] sm:$0xff]  ;;  %v169_v9 = vld [vmem:[#allocation7 + $0x10] sm:$0xff]  ;;  %v253_v12 = vld [vmem:[#allocation8] sm:$0xff]  ;;  %s867_s21 = sshll.u32 %s1213_s20, 4  ;;  %s868_s21 = int_to_ptr.vmem [resolvable:$true] %s867_s21 }
  0x4c   :  { %v170_v10 = vld [vmem:[#allocation7 + $0x18] sm:$0xff]  ;;  %v254_v13 = vld [vmem:[#allocation8 + $0x8] sm:$0xff]  ;;  %v341_v16 = vld [vmem:[#allocation5 + $0x10] sm:$0xff]  ;;  %s1174_s22 = scalar_lea.vmem %s868_s21, 384  ;;  %p1179_p5 = scmp.lt.s32.totalorder %s868_s21, %s868_s21 }
  0x4d   :  { %1033 = vmatpush3.bf16.msra.mxu0 %v1032_v4  ;;  %1036 = vmatpush3.bf16.msra.mxu1 %v1035_v7  ;;  %v1038_v11 = vpack.c.bf16 %v170_v10, %v169_v9  ;;  %v1041_v14 = vpack.c.bf16 %v254_v13, %v253_v12  ;;  %v881_v15 = vld [vmem:[%s1414_s2] ss:$0 sm:$0xff]  ;;  %v342_v17 = vld [vmem:[#allocation5 + $0x18] sm:$0xff]  ;;  %v339_v23 = vld [vmem:[#allocation2 + $0x8] sm:$0xff]  ;;  %p1175_p4 = scmp.ne.s32.totalorder %s868_s21, %s1174_s22  ;;  %p1180_p6 = scmp.lt.s32.totalorder %s1174_s22, %s1174_s22 }
  0x4e   :  { %1040 = vmatprep.subr.bf16.mxu0 %v1210_v0  ;;  %1037 = vmatprep.subr.bf16.mxu1 %v1210_v0  ;;  %v1047_v21 = vpack.c.bf16 %v342_v17, %v341_v16  ;;  %v255_v24 = vld [vmem:[#allocation8 + $0x10] sm:$0xff]  ;;  %v256_v25 = vld [vmem:[#allocation8 + $0x18] sm:$0xff]  ;;  %v426_v28 = vld [vmem:[#allocation7 + $0x20] sm:$0xff] }
  0x4f   :  { %v1044_v26 = vpack.c.bf16 %v256_v25, %v255_v24  ;;  %v883_v27 = vld [vmem:[%s1416_s4] ss:$0 sm:$0xff]  ;;  %v427_v29 = vld [vmem:[#allocation7 + $0x28] sm:$0xff]  ;;  %v888_v34 = vld [vmem:[%s1414_s2 + $0x1] ss:$0 sm:$0xff]  ;;  %p1181_p7 = por %p1180_p6, %p1179_p5 }
  0x50   :  { %949 = vmatmul.mubr.msk.f32.vlgmr.msra.gmra.mrb[0].mxu0 %vm92_vm1, %v82_v8  ;;  %v1050_v33 = vpack.c.bf16 %v427_v29, %v426_v28  ;;  %v428_v36 = vld [vmem:[#allocation7 + $0x30] sm:$0xff]  ;;  %v429_v37 = vld [vmem:[#allocation7 + $0x38] sm:$0xff]  ;;  %v601_v46 = vld [vmem:[#allocation2 + $0x10] sm:$0xff] }
  0x51   :  { %970 = vmatprep.mubr.msk.f32.mxu0 %vm1211_vm0, %v1212_v1  ;;  %1039 = vmatpush3.bf16.msra.mxu1 %v1038_v11  ;;  %v1053_v41 = vpack.c.bf16 %v429_v37, %v428_v36  ;;  %v603_v42 = vld [vmem:[#allocation5 + $0x20] sm:$0xff]  ;;  %v604_v43 = vld [vmem:[#allocation5 + $0x28] sm:$0xff]  ;;  %v513_v47 = vld [vmem:[#allocation8 + $0x20] sm:$0xff]  ;;  %p1182_p8 = pnand %p1181_p7, %p1175_p4 }
  0x52   :  { %1046 = vmatprep.subr.bf16.mxu1 %v1210_v0  ;;  %1042 = vmatpush3.bf16.msra.mxu0 %v1041_v14  ;;  %v1062_v45 = vpack.c.bf16 %v604_v43, %v603_v42  ;;  %v514_v48 = vld [vmem:[#allocation8 + $0x28] sm:$0xff]  ;;  %v515_v50 = vld [vmem:[#allocation8 + $0x30] sm:$0xff]  ;;  %v516_v51 = vld [vmem:[#allocation8 + $0x38] sm:$0xff] }
  0x53   :  { %1043 = vmatprep.subr.bf16.mxu0 %v1210_v0  ;;  %v1056_v49 = vpack.c.bf16 %v514_v48, %v513_v47  ;;  %v1059_v52 = vpack.c.bf16 %v516_v51, %v515_v50  ;;  %v885_v53 = vld [vmem:[%s1418_s6] ss:$0 sm:$0xff]  ;;  %v891_v57 = vld [vmem:[%s1416_s4 + $0x1] ss:$0 sm:$0xff]  ;;  %v688_v58 = vld [vmem:[#allocation7 + $0x40] sm:$0xff] }
  0x54   :  { %v689_v59 = vld [vmem:[#allocation7 + $0x48] sm:$0xff]  ;;  %v897_v2 = vld [vmem:[%s1414_s2 + $0x2] ss:$0 sm:$0xff]  ;;  %v690_v4 = vld [vmem:[#allocation7 + $0x50] sm:$0xff] }
  0x55   :  { %v1065_v63 = vpack.c.bf16 %v689_v59, %v688_v58  ;;  %v691_v5 = vld [vmem:[#allocation7 + $0x58] sm:$0xff]  ;;  %v775_v11 = vld [vmem:[#allocation8 + $0x40] sm:$0xff]  ;;  %v776_v12 = vld [vmem:[#allocation8 + $0x48] sm:$0xff] }
  0x56   :  { %1045 = vmatpush3.bf16.msra.mxu0 %v1044_v26  ;;  %v1068_v9 = vpack.c.bf16 %v691_v5, %v690_v4  ;;  %v1071_v13 = vpack.c.bf16 %v776_v12, %v775_v11  ;;  %v777_v14 = vld [vmem:[#allocation8 + $0x50] sm:$0xff]  ;;  %v903_v24 = vld [vmem:[%s1418_s6 + $0x2] ss:$0 sm:$0xff] }
  0x57   :  { %1049 = vmatprep.subr.bf16.mxu0 %v1210_v0 }
 0x123   :  { %v162_v18 = vpop.f32.mrb[0].mxu0 }
 0x124   :  { %v163_v19 = vadd.f32 %v881_v15, %v162_v18  ;;  %v950_v20 = vpop.f32.mrb[1].mxu0  ;;  %v778_v15 = vld [vmem:[#allocation8 + $0x58] sm:$0xff] }
 0x125   :  { %v1074_v16 = vpack.c.bf16 %v778_v15, %v777_v14  ;;  %v900_v20 = vld [vmem:[%s1416_s4 + $0x2] ss:$0 sm:$0xff] }
 0x126   :  { %v166_v22 = vmax.f32 %v163_v19, 0.0 }
 0x128   :  { %960 = vmatmul.mubr.msk.f32.vlgmr.msra.gmra.mrb[0].mxu1 %vm178_vm2, %v166_v22 }
 0x129   :  { %1048 = vmatpush3.bf16.msra.mxu1 %v1047_v21  ;;  %977 = vmatprep.mubr.msk.f32.mxu1 %vm1211_vm0, %v1212_v1 }
 0x12a   :  { %1055 = vmatprep.subr.bf16.mxu1 %v1210_v0 }
 0x12c   :  { %978 = vmatmul.mubr.msk.f32.vlgmr.msra.gmra.mrb[2].mxu1 %vm92_vm1, %v339_v23 }
 0x12d   :  { %999 = vmatprep.mubr.msk.f32.mxu1 %vm1211_vm0, %v1212_v1  ;;  %1057 = vmatpush3.bf16.msra.mxu1 %v1056_v49 }
 0x12e   :  { %1058 = vmatprep.subr.bf16.mxu1 %v1210_v0 }
 0x131   :  { %1060 = vmatpush3.bf16.msra.mxu1 %v1059_v52 }
 0x132   :  { %1064 = vmatprep.subr.bf16.mxu1 %v1210_v0 }
 0x1fb   :  { %v248_v30 = vpop.f32.mrb[0].mxu1 }
 0x1fc   :  { %v249_v31 = vadd.f32 %v883_v27, %v248_v30  ;;  %v961_v32 = vpop.f32.mrb[1].mxu1 }
 0x1fe   :  { %v252_v35 = vmax.f32 %v249_v31, 0.0 }
 0x1ff   :  { %v420_v38 = vpop.f32.mrb[2].mxu1 }
 0x200   :  { %971 = vmatmul.mubr.msk.f32.vlgmr.msra.gmra.mrb[2].mxu0 %vm178_vm2, %v252_v35  ;;  %v421_v39 = vadd.f32 %v888_v34, %v420_v38  ;;  %v979_v40 = vpop.f32.mrb[3].mxu1 }
 0x201   :  { %1051 = vmatpush3.bf16.msra.mxu0 %v1050_v33  ;;  %988 = vmatprep.mubr.msk.f32.mxu0 %vm1211_vm0, %v1212_v1 }
 0x202   :  { %1052 = vmatprep.subr.bf16.mxu0 %v1210_v0  ;;  %v424_v44 = vmax.f32 %v421_v39, 0.0 }
 0x205   :  { %1054 = vmatpush3.bf16.msra.mxu0 %v1053_v41 }
 0x206   :  { %1061 = vmatprep.subr.bf16.mxu0 %v1210_v0 }
 0x208   :  { %989 = vmatmul.mubr.msk.f32.vlgmr.msra.gmra.mrb[4].mxu0 %vm178_vm2, %v424_v44 }
 0x209   :  { %1063 = vmatpush3.bf16.msra.mxu0 %v1062_v45  ;;  %1006 = vmatprep.mubr.msk.f32.mxu0 %vm1211_vm0, %v1212_v1 }
 0x20a   :  { %1070 = vmatprep.subr.bf16.mxu0 %v1210_v0 }
 0x20c   :  { %1007 = vmatmul.mubr.msk.f32.vlgmr.msra.gmra.mrb[6].mxu0 %vm92_vm1, %v601_v46 }
 0x20d   :  { %1028 = vmatprep.mubr.msk.f32.mxu0 %vm1211_vm0, %v1212_v1  ;;  %1072 = vmatpush3.bf16.msra.mxu0 %v1071_v13 }
 0x20e   :  { %1073 = vmatprep.subr.bf16.mxu0 %v1210_v0 }
 0x211   :  { %1075 = vmatpush3.bf16.msra.mxu0 %v1074_v16 }
 0x2d3   :  { %v333_v54 = vpop.f32.mrb[2].mxu0 }
 0x2d4   :  { %v334_v55 = vadd.f32 %v885_v53, %v333_v54  ;;  %v972_v56 = vpop.f32.mrb[3].mxu0 }
 0x2d6   :  { %337 = vst [vmem:[#allocation10] sm:$0xff] %v334_v55 }
 0x2db   :  { %v507_v60 = vpop.f32.mrb[4].mxu0 }
 0x2dc   :  { %v508_v61 = vadd.f32 %v891_v57, %v507_v60  ;;  %v990_v62 = vpop.f32.mrb[5].mxu0 }
 0x2de   :  { %v511_v3 = vmax.f32 %v508_v61, 0.0 }
 0x2df   :  { %v682_v6 = vpop.f32.mrb[6].mxu0 }
 0x2e0   :  { %1000 = vmatmul.mubr.msk.f32.vlgmr.msra.gmra.mrb[4].mxu1 %vm178_vm2, %v511_v3  ;;  %v683_v7 = vadd.f32 %v897_v2, %v682_v6  ;;  %v1008_v8 = vpop.f32.mrb[7].mxu0 }
 0x2e1   :  { %1066 = vmatpush3.bf16.msra.mxu1 %v1065_v63  ;;  %1017 = vmatprep.mubr.msk.f32.mxu1 %vm1211_vm0, %v1212_v1  ;;  %v894_v1 = vld [vmem:[%s1418_s6 + $0x1] ss:$0 sm:$0xff] }
 0x2e2   :  { %1067 = vmatprep.subr.bf16.mxu1 %v1210_v0  ;;  %v686_v10 = vmax.f32 %v683_v7, 0.0 }
 0x2e5   :  { %1069 = vmatpush3.bf16.msra.mxu1 %v1068_v9 }
 0x2e8   :  { %1018 = vmatmul.mubr.msk.f32.vlgmr.msra.gmra.mrb[6].mxu1 %vm178_vm2, %v686_v10 }
 0x3b3   :  { %v594_v17 = vpop.f32.mrb[4].mxu1 }
 0x3b4   :  { %v595_v18 = vadd.f32 %v894_v1, %v594_v17  ;;  %v1001_v19 = vpop.f32.mrb[5].mxu1 }
 0x3b6   :  { %599 = vst [vmem:[#allocation10 + $0x8] sm:$0xff] %v595_v18 }
 0x3bb   :  { %v769_v21 = vpop.f32.mrb[6].mxu1 }
 0x3bc   :  { %v770_v22 = vadd.f32 %v900_v20, %v769_v21  ;;  %v1019_v23 = vpop.f32.mrb[7].mxu1 }
 0x3be   :  { %v773_v0 = vmax.f32 %v770_v22, 0.0 }
 0x3c0   :  { %1029 = vmatmul.mubr.msk.f32.vlgmr.msra.gmra.mrb[8].mxu0 %vm178_vm2, %v773_v0 }
 0x493   :  { %v856_v25 = vpop.f32.mrb[8].mxu0 }
 0x494   :  { %v857_v26 = vadd.f32 %v903_v24, %v856_v25  ;;  %v1030_v27 = vpop.f32.mrb[9].mxu0 }
 0x496   :  { %861 = vst [vmem:[#allocation10 + $0x10] sm:$0xff] %v857_v26 }
 0x497   :  { %1185 = shalt.err (!%p1182_p8)
}
 0x498   :  { %s1186_s24 = scalar_lea.hbm %s1419_s7, 384 }
 0x499   :  { %p1187_p9 = scmp.ne.s32.totalorder %s1419_s7, %s1186_s24  ;;  %p1190_p10 = scmp.lt.u32.totalorder %s1186_s24, %s1419_s7 }
 0x49b   :  { %p1192_p11 = pnand %p1190_p10, %p1187_p9 }
 0x49d   :  { %1195 = shalt.err (!%p1192_p11)
}
 0x49e   :  { %873 = dma.vmem_to_hbm [thread:$0]  %s868_s21, 384, %s1419_s7, [#allocation4], %s1206_s13, %s1206_s13, %s1207_s14  }
 0x49f   :  { %1202 = dma.done.wait [#allocation4], 384  }
 0x4a0   :  { %1203 = vsyncadd [#allocation4], 4294966912 }
 0x4a1   :  { %877 = vsyncpa [#allocation3], 1 }
 0x4a2   :  { %878 = vsyncpa [#allocation6], 1 }
 0x4a3   :  { %879 = vsyncpa [#allocation9], 1 }
 0x4a4   :  { %880 = vsyncpa [#allocation4], 1 }

</bundles_post_ra>
